<compile_context>
chip_gen: v6e
topology: v6e:2x2x1
jax: 0.10.0
libtpu: 0.0.40
codegen_flags: <defaults>
</compile_context>

<pallas_src>
import functools
from typing import NamedTuple

import jax
import jax.numpy as jnp
from jax.experimental import pallas as pl
from jax.experimental.pallas import tpu as pltpu

LANE = 128
BN_EPS = 1e-5


def _round_up(n, m):
    return ((n + m - 1) // m) * m


def _pad2d(a, rows, cols, dtype):
    """Zero-pad a 2-D array up to (rows, cols) and cast."""
    out = jnp.zeros((rows, cols), dtype)
    return out.at[: a.shape[0], : a.shape[1]].set(a.astype(dtype))


def _choose_tk(k_lane, tk_request):
    """Largest multiple of 128 that divides k_lane and is <= tk_request.

    Guarantees (a) TK % 128 == 0 (Mosaic tiling constraint) and (b) TK divides
    the lane-padded K so x never needs an extra zero-padded copy beyond lane
    padding.
    """
    tk_request = max(LANE, (min(tk_request, k_lane) // LANE) * LANE)
    m = k_lane // LANE
    best = 1
    for d in range(1, m + 1):
        if m % d == 0 and d * LANE <= tk_request:
            best = d
    return best * LANE


class PreparedParams(NamedTuple):
    """Padded / cast weights, built once and reused across forward calls."""
    we: jax.Array     # (K_lane, F_pad)  bf16   encoder backbone weight
    be: jax.Array     # (1, F_pad)       f32    encoder backbone bias
    wh: jax.Array     # (F_pad, NC_pad+OUT_pad) bf16  [classifier | projector]
    bh: jax.Array     # (1, NC_pad+OUT_pad)     f32   [bc | b_proj]
    gamma: jax.Array  # (1, OUT_pad)     f32    BN scale
    beta: jax.Array   # (1, OUT_pad)     f32    BN shift


def prepare_params(params):
    """Pad/cast all weights ONCE (cache the result; do not call per-forward)."""
    we, be = params["we"], params["be"]
    wc, bc = params["wc"], params["bc"]
    wp, bp = params["w_proj"], params["b_proj"]
    gamma, beta = params["bn_gamma"], params["bn_beta"]

    K, F = we.shape
    NC = wc.shape[1]
    OUT = wp.shape[1]

    K_lane = _round_up(K, LANE)
    F_pad = _round_up(F, LANE)
    NC_pad = _round_up(NC, LANE)
    OUT_pad = _round_up(OUT, LANE)

    prep = PreparedParams(
        we=_pad2d(we, K_lane, F_pad, jnp.bfloat16),
        be=_pad2d(be, 1, F_pad, jnp.float32),
        wh=jnp.concatenate(
            [_pad2d(wc, F_pad, NC_pad, jnp.bfloat16),
             _pad2d(wp, F_pad, OUT_pad, jnp.bfloat16)], axis=1),
        bh=jnp.concatenate(
            [_pad2d(bc, 1, NC_pad, jnp.float32),
             _pad2d(bp, 1, OUT_pad, jnp.float32)], axis=1),
        gamma=_pad2d(gamma, 1, OUT_pad, jnp.float32),
        beta=_pad2d(beta, 1, OUT_pad, jnp.float32),
    )
    return prep


# ---------------------------------------------------------------------------
# Fused kernel: encoder backbone GEMM (K-tiled) + [classifier | projector] head
#               + BatchNorm1d (training-mode batch statistics)
# ---------------------------------------------------------------------------
def fused_student_kernel(nc_pad, out_pad,
                         x_ref, we_ref, be_ref, wh_ref, bh_ref,
                         gamma_ref, beta_ref,
                         feat_ref, preds_ref, acc_ref):
    k = pl.program_id(0)

    @pl.when(k == 0)
    def _init():
        acc_ref[...] = jnp.zeros_like(acc_ref)

    # Backbone GEMM: per-tile bf16 cast of x (no extra padded x copy in HBM),
    # bf16 MXU operands, f32 accumulation across K tiles.
    acc_ref[...] += jnp.dot(x_ref[...].astype(jnp.bfloat16), we_ref[...],
                            preferred_element_type=jnp.float32)

    @pl.when(k == pl.num_programs(0) - 1)
    def _finalize():
        # Bias applied once in the finalize step (not per K iteration).
        feat_enc = acc_ref[...] + be_ref[...]                       # (B, F_pad) f32

        # One wide GEMM for both heads: W_head = [Wc | W_proj], lane-dense N.
        y = jnp.dot(feat_enc.astype(jnp.bfloat16), wh_ref[...],
                    preferred_element_type=jnp.float32) + bh_ref[...]

        # Classifier logits (lane-aligned 128-wide slice).
        preds_ref[...] = y[:, :nc_pad].astype(preds_ref.dtype)

        # Projector output + BatchNorm1d (training mode): batch mean, biased
        # variance, eps inside the rsqrt. Kept in f32 on the VPU/EUP.
        y_proj = y[:, nc_pad:nc_pad + out_pad]
        mean = jnp.mean(y_proj, axis=0, keepdims=True)
        diff = y_proj - mean
        var = jnp.mean(diff * diff, axis=0, keepdims=True)
        y_hat = diff * jax.lax.rsqrt(var + BN_EPS)
        feat_ref[...] = (y_hat * gamma_ref[...] + beta_ref[...]).astype(feat_ref.dtype)


# ---------------------------------------------------------------------------
# Wrapper (takes pre-padded params from prepare_params)
# ---------------------------------------------------------------------------
def projector_distillation_student_forward(x, prep: PreparedParams, *,
                                            num_classes, out_dim, tk=2048):
    """Forward pass mirroring ProjectorDistillationStudent.forward.

    x:    (B, C, H, W) float32 (NCHW, flattened row-major for the encoder GEMM).
    prep: PreparedParams from prepare_params() (padded/cast once, cached).
    returns (feat_projected, preds).
    """
    B = x.shape[0]
    x_flat = x.reshape(B, -1)
    K = x_flat.shape[1]

    K_lane = prep.we.shape[0]
    F_pad = prep.we.shape[1]
    N_head = prep.wh.shape[1]
    OUT_pad = prep.gamma.shape[1]
    NC_pad = N_head - OUT_pad

    # Lane padding of x only when K is not already a multiple of 128
    # (zero columns are a no-op for the GEMM).  x stays f32; bf16 cast is
    # done per-tile inside the kernel.
    if K_lane != K:
        x_p = jnp.zeros((B, K_lane), x_flat.dtype).at[:, :K].set(x_flat)
    else:
        x_p = x_flat

    # TK: multiple of 128 that divides K_lane (no zero-padded x copy needed).
    TK = _choose_tk(K_lane, tk)
    grid = (K_lane // TK,)

    # VMEM budget (bytes): double-buffered x / We tiles, single-buffered head
    # operands, accumulator, resident outputs.  Cap at 64 MiB so the same
    # configuration also fits v7x's 64 MiB per-TC VMEM.
    budget = (2 * B * TK * 4            # x tiles (f32, double-buffered)
              + 2 * TK * F_pad * 2      # We tiles (bf16, double-buffered)
              + F_pad * N_head * 2      # W_head (bf16, single-buffered)
              + (F_pad + N_head + 2 * OUT_pad) * 4   # biases / BN affine
              + B * F_pad * 4           # f32 accumulator scratch
              + 2 * B * (OUT_pad + NC_pad) * 4)      # outputs
    vmem_limit = int(min(max(32 * 1024 * 1024, 2 * budget), 64 * 1024 * 1024))

    kernel = functools.partial(fused_student_kernel, NC_pad, OUT_pad)

    # Constant-index operands: single-buffered (second pipeline buffer is waste).
    const_buf = pl.Buffered(1)

    feat_p, preds_p = pl.pallas_call(
        kernel,
        out_shape=(
            jax.ShapeDtypeStruct((B, OUT_pad), jnp.float32),
            jax.ShapeDtypeStruct((B, NC_pad), jnp.float32),
        ),
        grid_spec=pltpu.PrefetchScalarGridSpec(
            num_scalar_prefetch=0,
            grid=grid,
            in_specs=[
                pl.BlockSpec((B, TK), lambda k: (0, k)),           # x   (K-tiled)
                pl.BlockSpec((TK, F_pad), lambda k: (k, 0)),       # We  (K-tiled)
                pl.BlockSpec((1, F_pad), lambda k: (0, 0),
                             pipeline_mode=const_buf),             # be
                pl.BlockSpec((F_pad, N_head), lambda k: (0, 0),
                             pipeline_mode=const_buf),             # [Wc|Wp]
                pl.BlockSpec((1, N_head), lambda k: (0, 0),
                             pipeline_mode=const_buf),             # [bc|bp]
                pl.BlockSpec((1, OUT_pad), lambda k: (0, 0),
                             pipeline_mode=const_buf),             # bn gamma
                pl.BlockSpec((1, OUT_pad), lambda k: (0, 0),
                             pipeline_mode=const_buf),             # bn beta
            ],
            out_specs=(
                pl.BlockSpec((B, OUT_pad), lambda k: (0, 0)),      # projected feat
                pl.BlockSpec((B, NC_pad), lambda k: (0, 0)),       # preds
            ),
            scratch_shapes=[pltpu.VMEM((B, F_pad), jnp.float32)],  # f32 accumulator
        ),
        compiler_params=pltpu.CompilerParams(
            # K is a reduction axis (accumulator carried across it).
            # TODO(synk): add a leading "parallel" axis (K- or B-split with a
            # partial-sum combine) to use both TensorCores on v7x.
            dimension_semantics=("arbitrary",),
            vmem_limit_bytes=vmem_limit,
        ),
    )(x_p, prep.we, prep.be, prep.wh, prep.bh, prep.gamma, prep.beta)

    # Strip lane padding (glue slices in the JAX wrapper).
    return feat_p[:, :out_dim], preds_p[:, :num_classes]


# ---------------------------------------------------------------------------
# Pure-JAX reference (same bf16-operand / f32-accumulate numerics)
# ---------------------------------------------------------------------------
def reference_forward(x, params):
    B = x.shape[0]
    x_flat = x.reshape(B, -1).astype(jnp.bfloat16)
    feat_enc = jnp.dot(x_flat, params["we"].astype(jnp.bfloat16),
                       preferred_element_type=jnp.float32) + params["be"]
    feat_bf = feat_enc.astype(jnp.bfloat16)
    preds = jnp.dot(feat_bf, params["wc"].astype(jnp.bfloat16),
                    preferred_element_type=jnp.float32) + params["bc"]
    y = jnp.dot(feat_bf, params["w_proj"].astype(jnp.bfloat16),
                preferred_element_type=jnp.float32) + params["b_proj"]
    mean = jnp.mean(y, axis=0, keepdims=True)
    var = jnp.mean((y - mean) ** 2, axis=0, keepdims=True)
    feat = (y - mean) * jax.lax.rsqrt(var + BN_EPS) * params["bn_gamma"] \
        + params["bn_beta"]
    return feat, preds


if __name__ == "__main__":
    # Small deterministic shapes consistent with the module's forward.
    B, C, H, W = 8, 4, 16, 16
    num_features = 32          # encoder.num_features
    out_dim = 16               # `out` argument of ProjectorDistillationStudent
    num_classes = 10           # encoder classification head (preds)

    key = jax.random.PRNGKey(0)
    kx, k1, k2, k3, k4, k5, k6 = jax.random.split(key, 7)

    x = jax.random.normal(kx, (B, C, H, W), dtype=jnp.float32)

    params = {
        # synthetic encoder
        "we": jax.random.normal(k1, (C * H * W, num_features), jnp.float32) * 0.02,
        "be": jax.random.normal(k2, (1, num_features), jnp.float32) * 0.02,
        "wc": jax.random.normal(k3, (num_features, num_classes), jnp.float32) * 0.1,
        "bc": jax.random.normal(k4, (1, num_classes), jnp.float32) * 0.1,
        # projector: nn.Linear(num_features, out) + nn.BatchNorm1d(out)
        "w_proj": jax.random.normal(k5, (num_features, out_dim), jnp.float32) * 0.1,
        "b_proj": jax.random.normal(k6, (1, out_dim), jnp.float32) * 0.1,
        "bn_gamma": jnp.ones((1, out_dim), jnp.float32),
        "bn_beta": jnp.zeros((1, out_dim), jnp.float32),
    }

    # Pad / cast weights ONCE; the jitted forward reuses the cached copies.
    prep = jax.tree_util.tree_map(jax.block_until_ready, prepare_params(params))

    # tk=512 here exercises the K-tiled accumulation path (K=1024 -> 2 steps);
    # the default tk=2048 is the recommended setting for realistic K.
    fwd = jax.jit(functools.partial(projector_distillation_student_forward,
                                    num_classes=num_classes, out_dim=out_dim,
                                    tk=512))
    feat, preds = fwd(x, prep)
    feat = jax.block_until_ready(feat)
    preds = jax.block_until_ready(preds)

    feat_ref, preds_ref = reference_forward(x, params)
    assert feat.shape == (B, out_dim) and preds.shape == (B, num_classes)
    assert jnp.allclose(preds, preds_ref, atol=1e-2, rtol=1e-2), "preds mismatch"
    assert jnp.allclose(feat, feat_ref, atol=1e-2, rtol=1e-2), "feat mismatch"

    print("KERNEL_OK")
</pallas_src>

<mosaic_0001>
module attributes {stable_mosaic.version = 11 : i64} {
  func.func @fused_student_kernel(%arg0: i32, %arg1: memref<8x512xf32, #tpu.memory_space<vmem>>, %arg2: memref<512x128xbf16, #tpu.memory_space<vmem>>, %arg3: memref<1x128xf32, #tpu.memory_space<vmem>>, %arg4: memref<128x256xbf16, #tpu.memory_space<vmem>>, %arg5: memref<1x256xf32, #tpu.memory_space<vmem>>, %arg6: memref<1x128xf32, #tpu.memory_space<vmem>>, %arg7: memref<1x128xf32, #tpu.memory_space<vmem>>, %arg8: memref<8x128xf32, #tpu.memory_space<vmem>>, %arg9: memref<8x128xf32, #tpu.memory_space<vmem>>, %arg10: memref<8x128xf32, #tpu.memory_space<vmem>>) attributes {dimension_semantics = [#tpu.dimension_semantics<arbitrary>], iteration_bounds = array<i64: 2>, scalar_prefetch = 0 : i64, scratch_operands = 1 : i64, tpu.core_type = #tpu.core_type<tc>, window_params = [{transform_indices = @transform_0, window_bounds = array<i64: 8, 512>}, {transform_indices = @transform_1, window_bounds = array<i64: 512, 128>}, {pipeline_mode = #tpu.pipeline_mode<synchronous>, transform_indices = @transform_2, window_bounds = array<i64: 1, 128>}, {pipeline_mode = #tpu.pipeline_mode<synchronous>, transform_indices = @transform_3, window_bounds = array<i64: 128, 256>}, {pipeline_mode = #tpu.pipeline_mode<synchronous>, transform_indices = @transform_4, window_bounds = array<i64: 1, 256>}, {pipeline_mode = #tpu.pipeline_mode<synchronous>, transform_indices = @transform_5, window_bounds = array<i64: 1, 128>}, {pipeline_mode = #tpu.pipeline_mode<synchronous>, transform_indices = @transform_6, window_bounds = array<i64: 1, 128>}, {pipeline_mode = #tpu.pipeline_mode<synchronous>, transform_indices = @transform_7, window_bounds = array<i64: 8, 128>}, {pipeline_mode = #tpu.pipeline_mode<synchronous>, transform_indices = @transform_8, window_bounds = array<i64: 8, 128>}]} {
    %c0_i32 = arith.constant 0 : i32
    %0 = arith.cmpi eq, %arg0, %c0_i32 : i32
    %1 = arith.extui %0 : i1 to i32
    %c0_i32_0 = arith.constant 0 : i32
    %2 = arith.cmpi ne, %1, %c0_i32_0 : i32
    scf.if %2 {
      %cst_9 = arith.constant 0.000000e+00 : f32
      %13 = vector.broadcast %cst_9 : f32 to vector<8x128xf32>
      %c0_10 = arith.constant 0 : index
      %c0_11 = arith.constant 0 : index
      %14 = vector.load %arg10[%c0_10, %c0_11] : memref<8x128xf32, #tpu.memory_space<vmem>>, vector<8x128xf32>
      tpu.vector_store %arg10[%c0_10, %c0_11], %13 {strides = array<i32>} : memref<8x128xf32, #tpu.memory_space<vmem>>, vector<8x128xf32>,
    } else {
    }
    %c0 = arith.constant 0 : index
    %c0_1 = arith.constant 0 : index
    %3 = vector.load %arg10[%c0, %c0_1] : memref<8x128xf32, #tpu.memory_space<vmem>>, vector<8x128xf32>
    %c0_2 = arith.constant 0 : index
    %c0_3 = arith.constant 0 : index
    %4 = vector.load %arg1[%c0_2, %c0_3] : memref<8x512xf32, #tpu.memory_space<vmem>>, vector<8x512xf32>
    %5 = arith.truncf %4 : vector<8x512xf32> to vector<8x512xbf16>
    %c0_4 = arith.constant 0 : index
    %c0_5 = arith.constant 0 : index
    %6 = vector.load %arg2[%c0_4, %c0_5] : memref<512x128xbf16, #tpu.memory_space<vmem>>, vector<512x128xbf16>
    %cst = arith.constant dense<0.000000e+00> : vector<8x128xf32>
    %7 = tpu.matmul %5, %6, %cst {dimension_numbers = #tpu.dot_dimension_numbers<[1], [0], [0], [1], [0, 0, 1, 1], [], []>} : vector<8x512xbf16>, vector<512x128xbf16>, vector<8x128xf32> -> vector<8x128xf32>
    %8 = arith.addf %3, %7 : vector<8x128xf32>
    %c0_6 = arith.constant 0 : index
    %c0_7 = arith.constant 0 : index
    %9 = vector.load %arg10[%c0_6, %c0_7] : memref<8x128xf32, #tpu.memory_space<vmem>>, vector<8x128xf32>
    tpu.vector_store %arg10[%c0_6, %c0_7], %8 {strides = array<i32>} : memref<8x128xf32, #tpu.memory_space<vmem>>, vector<8x128xf32>,
    %c1_i32 = arith.constant 1 : i32
    %10 = arith.cmpi eq, %arg0, %c1_i32 : i32
    %11 = arith.extui %10 : i1 to i32
    %c0_i32_8 = arith.constant 0 : i32
    %12 = arith.cmpi ne, %11, %c0_i32_8 : i32
    scf.if %12 {
      %c0_9 = arith.constant 0 : index
      %c0_10 = arith.constant 0 : index
      %13 = vector.load %arg10[%c0_9, %c0_10] : memref<8x128xf32, #tpu.memory_space<vmem>>, vector<8x128xf32>
      %c0_11 = arith.constant 0 : index
      %c0_12 = arith.constant 0 : index
      %14 = vector.load %arg3[%c0_11, %c0_12] : memref<1x128xf32, #tpu.memory_space<vmem>>, vector<1x128xf32>
      %15 = vector.broadcast %14 : vector<1x128xf32> to vector<8x128xf32>
      %16 = arith.addf %13, %15 : vector<8x128xf32>
      %17 = arith.truncf %16 : vector<8x128xf32> to vector<8x128xbf16>
      %c0_13 = arith.constant 0 : index
      %c0_14 = arith.constant 0 : index
      %18 = vector.load %arg4[%c0_13, %c0_14] : memref<128x256xbf16, #tpu.memory_space<vmem>>, vector<128x256xbf16>
      %cst_15 = arith.constant dense<0.000000e+00> : vector<8x256xf32>
      %19 = tpu.matmul %17, %18, %cst_15 {dimension_numbers = #tpu.dot_dimension_numbers<[1], [0], [0], [1], [0, 0, 1, 1], [], []>} : vector<8x128xbf16>, vector<128x256xbf16>, vector<8x256xf32> -> vector<8x256xf32>
      %c0_16 = arith.constant 0 : index
      %c0_17 = arith.constant 0 : index
      %20 = vector.load %arg5[%c0_16, %c0_17] : memref<1x256xf32, #tpu.memory_space<vmem>>, vector<1x256xf32>
      %21 = vector.broadcast %20 : vector<1x256xf32> to vector<8x256xf32>
      %22 = arith.addf %19, %21 : vector<8x256xf32>
      %23 = vector.extract_strided_slice %22 {offsets = [0, 0], sizes = [8, 128], strides = [1, 1]} : vector<8x256xf32> to vector<8x128xf32>
      %c0_18 = arith.constant 0 : index
      %c0_19 = arith.constant 0 : index
      %24 = vector.load %arg9[%c0_18, %c0_19] : memref<8x128xf32, #tpu.memory_space<vmem>>, vector<8x128xf32>
      tpu.vector_store %arg9[%c0_18, %c0_19], %23 {strides = array<i32>} : memref<8x128xf32, #tpu.memory_space<vmem>>, vector<8x128xf32>,
      %25 = vector.extract_strided_slice %22 {offsets = [0, 128], sizes = [8, 128], strides = [1, 1]} : vector<8x256xf32> to vector<8x128xf32>
      %cst_20 = arith.constant dense<0.000000e+00> : vector<128xf32>
      %26 = vector.multi_reduction <add>, %25, %cst_20 [0] : vector<8x128xf32> to vector<128xf32>
      %27 = vector.shape_cast %26 : vector<128xf32> to vector<1x128xf32>
      %cst_21 = arith.constant 8.000000e+00 : f32
      %28 = vector.broadcast %cst_21 : f32 to vector<1x128xf32>
      %29 = arith.divf %27, %28 : vector<1x128xf32>
      %30 = vector.broadcast %29 : vector<1x128xf32> to vector<8x128xf32>
      %31 = arith.subf %25, %30 : vector<8x128xf32>
      %32 = arith.mulf %31, %31 : vector<8x128xf32>
      %cst_22 = arith.constant dense<0.000000e+00> : vector<128xf32>
      %33 = vector.multi_reduction <add>, %32, %cst_22 [0] : vector<8x128xf32> to vector<128xf32>
      %34 = vector.shape_cast %33 : vector<128xf32> to vector<1x128xf32>
      %cst_23 = arith.constant 8.000000e+00 : f32
      %35 = vector.broadcast %cst_23 : f32 to vector<1x128xf32>
      %36 = arith.divf %34, %35 : vector<1x128xf32>
      %cst_24 = arith.constant 9.99999974E-6 : f32
      %37 = vector.broadcast %cst_24 : f32 to vector<1x128xf32>
      %38 = arith.addf %36, %37 : vector<1x128xf32>
      %39 = math.rsqrt %38 : vector<1x128xf32>
      %40 = vector.broadcast %39 : vector<1x128xf32> to vector<8x128xf32>
      %41 = arith.mulf %31, %40 : vector<8x128xf32>
      %c0_25 = arith.constant 0 : index
      %c0_26 = arith.constant 0 : index
      %42 = vector.load %arg6[%c0_25, %c0_26] : memref<1x128xf32, #tpu.memory_space<vmem>>, vector<1x128xf32>
      %43 = vector.broadcast %42 : vector<1x128xf32> to vector<8x128xf32>
      %44 = arith.mulf %41, %43 : vector<8x128xf32>
      %c0_27 = arith.constant 0 : index
      %c0_28 = arith.constant 0 : index
      %45 = vector.load %arg7[%c0_27, %c0_28] : memref<1x128xf32, #tpu.memory_space<vmem>>, vector<1x128xf32>
      %46 = vector.broadcast %45 : vector<1x128xf32> to vector<8x128xf32>
      %47 = arith.addf %44, %46 : vector<8x128xf32>
      %c0_29 = arith.constant 0 : index
      %c0_30 = arith.constant 0 : index
      %48 = vector.load %arg8[%c0_29, %c0_30] : memref<8x128xf32, #tpu.memory_space<vmem>>, vector<8x128xf32>
      tpu.vector_store %arg8[%c0_29, %c0_30], %47 {strides = array<i32>} : memref<8x128xf32, #tpu.memory_space<vmem>>, vector<8x128xf32>,
    } else {
    }
    return
  }
  func.func @transform_0(%arg0: i32) -> (i32, i32) {
    %c0_i32 = arith.constant 0 : i32
    %c0_i32_0 = arith.constant 0 : i32
    return %c0_i32, %arg0 : i32, i32
  }
  func.func @transform_1(%arg0: i32) -> (i32, i32) {
    %c0_i32 = arith.constant 0 : i32
    %c0_i32_0 = arith.constant 0 : i32
    return %arg0, %c0_i32 : i32, i32
  }
  func.func @transform_2(%arg0: i32) -> (i32, i32) {
    %c0_i32 = arith.constant 0 : i32
    %c0_i32_0 = arith.constant 0 : i32
    %c0_i32_1 = arith.constant 0 : i32
    return %c0_i32, %c0_i32_0 : i32, i32
  }
  func.func @transform_3(%arg0: i32) -> (i32, i32) {
    %c0_i32 = arith.constant 0 : i32
    %c0_i32_0 = arith.constant 0 : i32
    %c0_i32_1 = arith.constant 0 : i32
    return %c0_i32, %c0_i32_0 : i32, i32
  }
  func.func @transform_4(%arg0: i32) -> (i32, i32) {
    %c0_i32 = arith.constant 0 : i32
    %c0_i32_0 = arith.constant 0 : i32
    %c0_i32_1 = arith.constant 0 : i32
    return %c0_i32, %c0_i32_0 : i32, i32
  }
  func.func @transform_5(%arg0: i32) -> (i32, i32) {
    %c0_i32 = arith.constant 0 : i32
    %c0_i32_0 = arith.constant 0 : i32
    %c0_i32_1 = arith.constant 0 : i32
    return %c0_i32, %c0_i32_0 : i32, i32
  }
  func.func @transform_6(%arg0: i32) -> (i32, i32) {
    %c0_i32 = arith.constant 0 : i32
    %c0_i32_0 = arith.constant 0 : i32
    %c0_i32_1 = arith.constant 0 : i32
    return %c0_i32, %c0_i32_0 : i32, i32
  }
  func.func @transform_7(%arg0: i32) -> (i32, i32) {
    %c0_i32 = arith.constant 0 : i32
    %c0_i32_0 = arith.constant 0 : i32
    %c0_i32_1 = arith.constant 0 : i32
    return %c0_i32, %c0_i32_0 : i32, i32
  }
  func.func @transform_8(%arg0: i32) -> (i32, i32) {
    %c0_i32 = arith.constant 0 : i32
    %c0_i32_0 = arith.constant 0 : i32
    %c0_i32_1 = arith.constant 0 : i32
    return %c0_i32, %c0_i32_0 : i32, i32
  }
}

</mosaic_0001>

<bundles_post_ra>
// kernel: projector_distillation_student_forward.1
= control target key start
LH: loop header
LB: loop body
LE: loop exit
PB: predicated region body
PF: predicated region fallthrough
CT: control target
= control target key end

     0   :  { %14 = vsyncpa [#allocation4], 0  ;;  %s1448_s0 = inlined_call_operand.vmem [shape: f32[8,1024], index: 0, kind: input, shape index: {}]   ;;  %s1449_s1 = inlined_call_operand.vmem [shape: bf16[1024,128], index: 1, kind: input, shape index: {}]   ;;  %s1450_s2 = inlined_call_operand.vmem [shape: f32[1,128], index: 2, kind: input, shape index: {}]   ;;  %s1451_s3 = inlined_call_operand.hbm [shape: bf16[128,256], index: 3, kind: input, shape index: {}]   ;;  %s1452_s4 = inlined_call_operand.vmem [shape: f32[1,256], index: 4, kind: input, shape index: {}]   ;;  %s1453_s5 = inlined_call_operand.vmem [shape: f32[1,128], index: 5, kind: input, shape index: {}]   ;;  %s1454_s6 = inlined_call_operand.vmem [shape: f32[1,128], index: 6, kind: input, shape index: {}]   ;;  %s1455_s7 = inlined_call_operand.hbm [shape: f32[8,128], index: 7, kind: output, shape index: {0}]   ;;  %s1456_s8 = inlined_call_operand.hbm [shape: f32[8,128], index: 8, kind: output, shape index: {1}]  }
   0x1   :  { %15 = vsyncpa [#allocation5], 0 }
   0x2   :  { %16 = vsyncpa [#allocation8], 0  ;;  %s1330_s27 = smov 0  }
   0x3 LB: > { %s1336_s28 = sadd.s32 4294967295, %s1276_s27   ;;  %p977_p0 = scmp.ge.s32.totalorder %s1276_s27, 1  ;;  %s1276_s27 = sphi %s1330_s27, %s22_s27  }
   0x4   : > { %p226_p1 = scmp.lt.s32.totalorder %s1276_s27, 3  ;;  %s1278_s29 = smov [#allocation3]  }
   0x5   : > { %s241_s30 = sshll.u32 %s1278_s29, 4  ;;  %p1105_p4 = scmp.eq.s32.totalorder %s1336_s28, 0  ;;  %s242_s30 = int_to_ptr.vmem [resolvable:$true] %s241_s30 }
   0x6   : > { %p1341_p3 = pnand %p977_p0, %p226_p1  ;;  %s1195_s10 = scalar_lea.vmem %s242_s30, 2048 }
   0x7   : > { %p1196_p8 = scmp.ne.s32.totalorder %s242_s30, %s1195_s10  ;;  %p1203_p11 = scmp.lt.s32.totalorder %s242_s30, %s242_s30 }
   0x8   : > { %p1101_p5 = pneg %p1341_p3  ;;  %p1204_p12 = scmp.lt.s32.totalorder %s1195_s10, %s1195_s10 }
   0xa   : > { %p1102_p6 = pnand %p1105_p4, %p1101_p5  ;;  %p1205_p13 = por %p1204_p12, %p1203_p11 }
   0xc   : > { %p1186_p7 = pneg %p1102_p6 }
   0xe   : > { %p1198_p9 = pnand %p1196_p8, %p1186_p7 }
  0x10   : > { %p1199_p10 = pneg %p1198_p9 }
  0x12   : > { %p1206_p2 = pnand %p1205_p13, %p1199_p10 }
  0x14   : > { %1209 = shalt.err (!%p1206_p2)
}
  0x15   : > { %s1279_s11 = smov 128   ;;  %s1280_s12 = smov 8  }
  0x16   : > { %1104 = dma.hbm_to_vmem [thread:$0]  (!%p1102_p6), %s1451_s3, 2048, %s242_s30, [#allocation4], %s1279_s11, %s1279_s11, %s1280_s12  }
  0x17   : > { %284 = sbr.rel (%p1341_p3) target bundleno = 592 (0x250), region = 48 }
  0x1c   : > { %1263 = dma.done.wait (%p1105_p4), [#allocation4], 2048  }
  0x1d   : > { %1265 = vsyncadd (%p1105_p4), [#allocation4], 4294965248  ;;  %s982_s15 = sshll.u32 %s1336_s28, 2  ;;  %s984_s16 = sshll.u32 %s1336_s28, 6 }
  0x1e   : > { %p319_p0 = scmp.lt.s32.totalorder %s982_s15, 7  ;;  %p325_p1 = scmp.lt.s32.totalorder %s984_s16, 127 }
  0x1f   : > { %p1458_p2 = scmp.ne.s32.totalorder %s1336_s28, 0 }
  0x20   : > { %s1460_s15 = smov (!%p319_p0, %s982_s15), 7  ;;  %s1462_s16 = smov (!%p325_p1, %s984_s16), 127 }
  0x21   : > { %s983_s17 = sshll.u32 %s1460_s15, 3  ;;  %s985_s21 = sshll.u32 %s1462_s16, 2 }
  0x22   : > { %s1364_s20 = scalar_lea.vmem %s1448_s0, %s983_s17  ;;  %s1369_s24 = scalar_lea.vmem %s1449_s1, %s985_s21 }
  0x23   : > { %334 = sbr.rel (%p1458_p2) target bundleno = 42 (0x2a), region = 56 }
  0x28   : > { %v1281_v0 = vmov 0.0  }
  0x29   : > { %335 = vst [vmem:[#allocation2] sm:$0xff] %v1281_v0 }
  0x2a PF: > { %v1126_v1 = vld [vmem:[%s1369_s24 + $0x78] sm:$0xff]   ;;  %v1130_v5 = vld [vmem:[%s1369_s24 + $0x70] sm:$0xff]   ;;  %v1134_v9 = vld [vmem:[%s1369_s24 + $0x68] sm:$0xff]   ;;  %p1019_p3 = scmp.ne.s32.totalorder %s1336_s28, 1 }
  0x2b   : > { %v1127_v2 = vld [vmem:[%s1369_s24 + $0xf8] sm:$0xff]   ;;  %1045 = vmatprep.subr.bf16.mxu0 %v1126_v1  ;;  %v1131_v6 = vld [vmem:[%s1369_s24 + $0xf0] sm:$0xff]   ;;  %v1135_v10 = vld [vmem:[%s1369_s24 + $0xe8] sm:$0xff]  }
  0x2c   : > { %v1128_v3 = vld [vmem:[%s1369_s24 + $0x38] sm:$0xff]   ;;  %1067 = vmatprep.subr.bf16.mxu1 %v1127_v2  ;;  %v1132_v7 = vld [vmem:[%s1369_s24 + $0x30] sm:$0xff]   ;;  %v1136_v11 = vld [vmem:[%s1369_s24 + $0x28] sm:$0xff]  }
  0x2d   : > { %v1129_v4 = vld [vmem:[%s1369_s24 + $0xb8] sm:$0xff]   ;;  %1046 = vmatpush3.bf16.msra.mxu0 %v1128_v3  ;;  %v1133_v8 = vld [vmem:[%s1369_s24 + $0xb0] sm:$0xff]   ;;  %v1137_v12 = vld [vmem:[%s1369_s24 + $0xa8] sm:$0xff]  }
  0x2e   : > { %1068 = vmatpush3.bf16.msra.mxu1 %v1129_v4  ;;  %1047 = vmatprep.subr.bf16.mxu0 %v1130_v5  ;;  %v1138_v13 = vld [vmem:[%s1369_s24 + $0x60] sm:$0xff]   ;;  %v1142_v17 = vld [vmem:[%s1369_s24 + $0x58] sm:$0xff]   ;;  %v1146_v21 = vld [vmem:[%s1369_s24 + $0x50] sm:$0xff]  }
  0x2f   : > { %1069 = vmatprep.subr.bf16.mxu1 %v1131_v6  ;;  %v1139_v14 = vld [vmem:[%s1369_s24 + $0xe0] sm:$0xff]   ;;  %v1143_v18 = vld [vmem:[%s1369_s24 + $0xd8] sm:$0xff]   ;;  %v1147_v22 = vld [vmem:[%s1369_s24 + $0xd0] sm:$0xff]  }
  0x30   : > { %v1140_v15 = vld [vmem:[%s1369_s24 + $0x20] sm:$0xff]   ;;  %v1144_v19 = vld [vmem:[%s1369_s24 + $0x18] sm:$0xff]   ;;  %v1148_v23 = vld [vmem:[%s1369_s24 + $0x10] sm:$0xff]  }
  0x31   : > { %1048 = vmatpush3.bf16.msra.mxu0 %v1132_v7  ;;  %v1141_v16 = vld [vmem:[%s1369_s24 + $0xa0] sm:$0xff]   ;;  %v1145_v20 = vld [vmem:[%s1369_s24 + $0x98] sm:$0xff]   ;;  %v1149_v24 = vld [vmem:[%s1369_s24 + $0x90] sm:$0xff]  }
  0x32   : > { %1070 = vmatpush3.bf16.msra.mxu1 %v1133_v8  ;;  %1049 = vmatprep.subr.bf16.mxu0 %v1134_v9  ;;  %v1150_v25 = vld [vmem:[%s1369_s24 + $0x48] sm:$0xff]   ;;  %v1154_v29 = vld [vmem:[%s1369_s24 + $0x40] sm:$0xff]   ;;  %v340_v34 = vld [vmem:[%s1364_s20 + $0x18] sm:$0xff] }
  0x33   : > { %1071 = vmatprep.subr.bf16.mxu1 %v1135_v10  ;;  %v1151_v26 = vld [vmem:[%s1369_s24 + $0xc8] sm:$0xff]   ;;  %v1155_v30 = vld [vmem:[%s1369_s24 + $0xc0] sm:$0xff]   ;;  %v344_v37 = vpack.c.bf16 %v340_v34, %v340_v34  ;;  %v339_v39 = vld [vmem:[%s1364_s20 + $0x10] sm:$0xff] }
  0x34   : > { %v1152_v27 = vld [vmem:[%s1369_s24 + $0x8] sm:$0xff]   ;;  %v1156_v31 = vld [vmem:[%s1369_s24] sm:$0xff]   ;;  %v343_v40 = vpack.c.bf16 %v339_v39, %v339_v39 }
  0x35   : > { %1050 = vmatpush3.bf16.msra.mxu0 %v1136_v11  ;;  %v1153_v28 = vld [vmem:[%s1369_s24 + $0x88] sm:$0xff]   ;;  %v1157_v32 = vld [vmem:[%s1369_s24 + $0x80] sm:$0xff]   ;;  %673 = vmatprep.mubr.bf16.mxu1 %v344_v37 }
  0x36   : > { %1072 = vmatpush3.bf16.msra.mxu1 %v1137_v12  ;;  %1051 = vmatprep.subr.bf16.mxu0 %v1138_v13  ;;  %v338_v33 = vld [vmem:[%s1364_s20 + $0x8] sm:$0xff]  ;;  %v337_v35 = vld [vmem:[%s1364_s20] sm:$0xff] }
  0x37   : > { %1073 = vmatprep.subr.bf16.mxu1 %v1139_v14  ;;  %v342_v36 = vpack.c.bf16 %v338_v33, %v338_v33  ;;  %v341_v38 = vpack.c.bf16 %v337_v35, %v337_v35  ;;  %v336_v47 = vld [vmem:[#allocation2] sm:$0xff] }
  0x39   : > { %1052 = vmatpush3.bf16.msra.mxu0 %v1140_v15  ;;  %633 = vmatprep.mubr.bf16.mxu0 %v342_v36 }
  0x3a   : > { %1074 = vmatpush3.bf16.msra.mxu1 %v1141_v16  ;;  %1053 = vmatprep.subr.bf16.mxu0 %v1142_v17 }
  0x3b   : > { %1075 = vmatprep.subr.bf16.mxu1 %v1143_v18 }
  0x3d   : > { %1054 = vmatpush3.bf16.msra.mxu0 %v1144_v19 }
  0x3e   : > { %1076 = vmatpush3.bf16.msra.mxu1 %v1145_v20  ;;  %1055 = vmatprep.subr.bf16.mxu0 %v1146_v21 }
  0x3f   : > { %1077 = vmatprep.subr.bf16.mxu1 %v1147_v22 }
  0x41   : > { %1056 = vmatpush3.bf16.msra.mxu0 %v1148_v23 }
  0x42   : > { %1078 = vmatpush3.bf16.msra.mxu1 %v1149_v24  ;;  %1057 = vmatprep.subr.bf16.mxu0 %v1150_v25 }
  0x43   : > { %1079 = vmatprep.subr.bf16.mxu1 %v1151_v26 }
  0x45   : > { %1058 = vmatpush3.bf16.msra.mxu0 %v1152_v27 }
  0x46   : > { %1080 = vmatpush3.bf16.msra.mxu1 %v1153_v28  ;;  %1059 = vmatprep.subr.bf16.mxu0 %v1154_v29 }
  0x47   : > { %1081 = vmatprep.subr.bf16.mxu1 %v1155_v30 }
  0x49   : > { %1060 = vmatpush3.bf16.msra.mxu0 %v1156_v31 }
  0x4a   : > { %1082 = vmatpush3.bf16.msra.mxu1 %v1157_v32 }
  0x4c   : > { %634 = vmatmul.mubr.bf16.vlgmr.msra.gmra.mxu0 %v341_v38 }
  0x4d   : > { %674 = vmatmul.mubr.bf16.vlgmr.msra.gmra.mxu1 %v343_v40 }
 0x10c   : > { %v1061_v41 = vpop.f32.mrf.mxu0 }
 0x10d   : > { %v1083_v42 = vpop.f32.mrf.mxu1 }
 0x10e   : > { %v1062_v43 = vpop.f32.mrf.mxu0 }
 0x10f   : > { %v1084_v44 = vpop.f32.mrf.mxu1  ;;  %v1063_v45 = vadd.f32 %v1062_v43, %v1061_v41 }
 0x110   : > { %v1085_v46 = vadd.f32 %v1084_v44, %v1083_v42  ;;  %v1064_v48 = vpop.f32.mrf.mxu0 }
 0x111   : > { %v1086_v49 = vpop.f32.mrf.mxu1 }
 0x112   : > { %v676_v50 = vadd.f32 %v1085_v46, %v1063_v45  ;;  %v1065_v51 = vpop.f32.mrf.mxu0  ;;  %686 = sbr.rel (%p1019_p3) target bundleno = 564 (0x234), region = 60 }
 0x113   : > { %v1087_v52 = vpop.f32.mrf.mxu1 }
 0x114   : > { %v681_v53 = vadd.f32 %v676_v50, %v336_v47 }
 0x116   : > { %682 = vst [vmem:[#allocation2] sm:$0xff] %v681_v53 }
 0x117   : > { %v1158_v54 = vld [vmem:[#allocation3 + $0x74] ss:$8 sps:$4 sm:$0xff]   ;;  %v1160_v55 = vld [vmem:[#allocation3 + $0x70] ss:$8 sps:$4 sm:$0xff]   ;;  %v1282_v56 = vmov 0   ;;  %v715_v11 = vlaneseq }
 0x118   : > { %837 = vmatprep.mubr.bf16.mxu0 %v1282_v56  ;;  %805 = vmatprep.subr.bf16.mxu0 %v1158_v54  ;;  %v1161_v57 = vld [vmem:[#allocation3 + $0x64] ss:$8 sps:$4 sm:$0xff]   ;;  %v1163_v58 = vld [vmem:[#allocation3 + $0x60] ss:$8 sps:$4 sm:$0xff]   ;;  %v1164_v59 = vld [vmem:[#allocation3 + $0x54] ss:$8 sps:$4 sm:$0xff]  }
 0x119   : > { %806 = vmatpush1.bf16.msra.mxu0 %v1160_v55  ;;  %v1166_v60 = vld [vmem:[#allocation3 + $0x50] ss:$8 sps:$4 sm:$0xff]   ;;  %v1167_v61 = vld [vmem:[#allocation3 + $0x44] ss:$8 sps:$4 sm:$0xff]   ;;  %v1169_v62 = vld [vmem:[#allocation3 + $0x40] ss:$8 sps:$4 sm:$0xff]  }
 0x11a   : > { %807 = vmatprep.subr.bf16.mxu0 %v1161_v57  ;;  %v1170_v63 = vld [vmem:[#allocation3 + $0x34] ss:$8 sps:$4 sm:$0xff]   ;;  %v1172_v0 = vld [vmem:[#allocation3 + $0x30] ss:$8 sps:$4 sm:$0xff]   ;;  %v1173_v1 = vld [vmem:[#allocation3 + $0x24] ss:$8 sps:$4 sm:$0xff]  }
 0x11b   : > { %v1175_v2 = vld [vmem:[#allocation3 + $0x20] ss:$8 sps:$4 sm:$0xff]   ;;  %v1176_v3 = vld [vmem:[#allocation3 + $0x14] ss:$8 sps:$4 sm:$0xff]   ;;  %v1178_v4 = vld [vmem:[#allocation3 + $0x10] ss:$8 sps:$4 sm:$0xff]  }
 0x11c   : > { %v1020_v6 = vld [vmem:[%s1450_s2] ss:$0 sm:$0xff]  ;;  %v1179_v7 = vld [vmem:[#allocation3 + $0x4] ss:$8 sps:$4 sm:$0xff]   ;;  %v1181_v9 = vld [vmem:[#allocation3] ss:$8 sps:$4 sm:$0xff]  }
 0x11d   : > { %808 = vmatpush1.bf16.msra.mxu0 %v1163_v58  ;;  %v687_v5 = vld [vmem:[#allocation2] sm:$0xff]  ;;  %v716_v12 = vshrl.u32 %v715_v11, 7 }
 0x11e   : > { %809 = vmatprep.subr.bf16.mxu0 %v1164_v59  ;;  %v695_v8 = vadd.f32 %v1020_v6, %v687_v5  ;;  %v713_v14 = vld [vmem:[%s1452_s4] sm:$0x3] }
 0x11f   : > { %v717_v13 = vsub.s32 0, %v716_v12  ;;  %v721_v15 = vsub.s32 1, %v716_v12  ;;  %v1037_v42 = vld [vmem:[%s1453_s5] ss:$0 sm:$0xff] }
 0x120   : > { %v696_v10 = vpack.c.bf16 %v695_v8, %v695_v8  ;;  %v1038_v44 = vld [vmem:[%s1454_s6] ss:$0 sm:$0xff] }
 0x121   : > { %810 = vmatpush1.bf16.msra.mxu0 %v1166_v60  ;;  %v718_v16 = vrot.slane %v713_v14, %v717_v13  ;;  %v722_v17 = vrot.slane %v713_v14, %v721_v15 }
 0x122   : > { %811 = vmatprep.subr.bf16.mxu0 %v1167_v61 }
 0x125   : > { %812 = vmatpush1.bf16.msra.mxu0 %v1169_v62 }
 0x126   : > { %813 = vmatprep.subr.bf16.mxu0 %v1170_v63 }
 0x129   : > { %814 = vmatpush1.bf16.msra.mxu0 %v1172_v0 }
 0x12a   : > { %815 = vmatprep.subr.bf16.mxu0 %v1173_v1 }
 0x12d   : > { %816 = vmatpush1.bf16.msra.mxu0 %v1175_v2 }
 0x12e   : > { %817 = vmatprep.subr.bf16.mxu0 %v1176_v3 }
 0x131   : > { %818 = vmatpush1.bf16.msra.mxu0 %v1178_v4 }
 0x132   : > { %819 = vmatprep.subr.bf16.mxu0 %v1179_v7 }
 0x135   : > { %820 = vmatpush1.bf16.msra.mxu0 %v1181_v9 }
 0x138   : > { %838 = vmatmul.mubr.bf16.vlgmr.msra.gmra.mxu0 %v696_v10 }
 0x1f8   : > { %v839_v18 = vpop.f32.mrf.mxu0 }
 0x1f9   : > { %v840_v19 = vadd.f32 %v839_v18, %v718_v16 }
 0x1fa   : > { %v841_v20 = vpop.f32.mrf.mxu0 }
 0x1fb   : > { %846 = vst [vmem:[#allocation7] sm:$0xff] %v840_v19  ;;  %v842_v21 = vadd.f32 %v841_v20, %v722_v17 }
 0x1fc   : > { %v843_v22 = vpop.f32.mrf.mxu0 }
 0x1fd   : > { %v847_v23 = vrot.slane %v842_v21, 4 }
 0x1fe   : > { %v844_v24 = vpop.f32.mrf.mxu0 }
 0x1ff   : > { %v848_v25 = vadd.f32 %v847_v23, %v842_v21 }
 0x201   : > { %v849_v26 = vrot.slane %v848_v25, 2 }
 0x203   : > { %v850_v27 = vadd.f32 %v849_v26, %v848_v25 }
 0x205   : > { %v851_v28 = vrot.slane %v850_v27, 1 }
 0x207   : > { %v852_v29 = vadd.f32 %v851_v28, %v850_v27 }
 0x209   : > { %v854_v30 = vmul.f32 0.125, %v852_v29 }
 0x20b   : > { %v855_v31 = vsub.f32 %v842_v21, %v854_v30 }
 0x20d   : > { %v856_v32 = vmul.f32 %v855_v31, %v855_v31 }
 0x20f   : > { %v857_v33 = vrot.slane %v856_v32, 4 }
 0x211   : > { %v858_v34 = vadd.f32 %v857_v33, %v856_v32 }
 0x213   : > { %v859_v35 = vrot.slane %v858_v34, 2 }
 0x215   : > { %v860_v36 = vadd.f32 %v859_v35, %v858_v34 }
 0x217   : > { %v861_v37 = vrot.slane %v860_v36, 1 }
 0x219   : > { %v862_v38 = vadd.f32 %v861_v37, %v860_v36 }
 0x21b   : > { %v863_v39 = vmul.f32 0.125, %v862_v38 }
 0x21d   : > { %v864_v40 = vadd.f32 1e-05, %v863_v39 }
 0x21f   : > { %1182 = vrsqrt.f32 %v864_v40 }
 0x22c   : > { %v1183_v41 = vpop.eup %1182 }
 0x22d   : > { %v866_v43 = vmul.f32 %v1183_v41, %v855_v31 }
 0x22f   : > { %v874_v45 = vmul.f32 %v1037_v42, %v866_v43 }
 0x231   : > { %v882_v46 = vadd.f32 %v1038_v44, %v874_v45 }
 0x233   : > { %883 = vst [vmem:[#allocation6] sm:$0xff] %v882_v46 }
 0x234 PF: > { %p1107_p4 = scmp.eq.s32.totalorder %s1336_s28, 1  ;;  %s1283_s13 = smov [#allocation6]  }
 0x235   : > { %s891_s14 = sshll.u32 %s1283_s13, 4  ;;  %s1284_s15 = smov [#allocation7]   ;;  %s892_s14 = int_to_ptr.vmem [resolvable:$true] %s891_s14 }
 0x236   : > { %s902_s16 = sshll.u32 %s1284_s15, 4  ;;  %s1210_s17 = scalar_lea.vmem %s892_s14, 128  ;;  %s903_s16 = int_to_ptr.vmem [resolvable:$true] %s902_s16 }
 0x237   : > { %p1211_p5 = scmp.ne.s32.totalorder %s892_s14, %s1210_s17  ;;  %p1217_p8 = scmp.lt.s32.totalorder %s892_s14, %s892_s14 }
 0x238   : > { %p1218_p9 = scmp.lt.s32.totalorder %s1210_s17, %s1210_s17 }
 0x239   : > { %p1212_p6 = pnand %p1211_p5, %p1107_p4 }
 0x23a   : > { %p1219_p10 = por %p1218_p9, %p1217_p8 }
 0x23b   : > { %p1213_p7 = pneg %p1212_p6 }
 0x23d   : > { %p1220_p11 = pnand %p1219_p10, %p1213_p7 }
 0x23f   : > { %1223 = shalt.err (!%p1220_p11)
}
 0x240   : > { %1094 = dma.vmem_to_hbm [thread:$0]  (%p1107_p4), %s892_s14, 128, %s1455_s7, [#allocation5]  }
 0x241   : > { %s1234_s20 = scalar_lea.vmem %s903_s16, 128  ;;  %p1241_p1 = scmp.lt.s32.totalorder %s903_s16, %s903_s16 }
 0x242   : > { %p1235_p12 = scmp.ne.s32.totalorder %s903_s16, %s1234_s20  ;;  %p1242_p2 = scmp.lt.s32.totalorder %s1234_s20, %s1234_s20 }
 0x244   : > { %p1236_p13 = pnand %p1235_p12, %p1107_p4  ;;  %p1243_p3 = por %p1242_p2, %p1241_p1 }
 0x246   : > { %p1237_p0 = pneg %p1236_p13 }
 0x248   : > { %p1244_p5 = pnand %p1243_p3, %p1237_p0 }
 0x24a   : > { %1247 = shalt.err (!%p1244_p5)
}
 0x24b   : > { %1096 = dma.vmem_to_hbm [thread:$0]  (%p1107_p4), %s903_s16, 128, %s1456_s8, [#allocation8]  }
 0x24c   : > { %1267 = dma.done.wait (%p1107_p4), [#allocation5], 128  }
 0x24d   : > { %1269 = vsyncadd (%p1107_p4), [#allocation5], 4294967168 }
 0x24e   : > { %1271 = dma.done.wait (%p1107_p4), [#allocation8], 128  }
 0x24f   : > { %1273 = vsyncadd (%p1107_p4), [#allocation8], 4294967168 }
 0x250 PF: > { %s22_s27 = sadd.s32 1, %s1276_s27  }
 0x251   : > { %p19_p6 = scmp.ge.s32.totalorder %s22_s27, 4  }
 0x253   :  { %21 = sbr.rel (!%p19_p6) target bundleno = 3 (0x3), region = 99 }
 0x258   :  { %919 = vsyncpa [#allocation4], 1 }
 0x259   :  { %921 = vsyncpa [#allocation4 + $0x1], 1 }
 0x25a   :  { %922 = vsyncpa [#allocation5], 1 }
 0x25b   :  { %924 = vsyncpa [#allocation5 + $0x1], 1 }
 0x25c   :  { %925 = vsyncpa [#allocation8], 1 }

</bundles_post_ra>
